<compile_context>
chip_gen: v7x
topology: tpu7x:2x2x1
jax: 0.10.0
libtpu: 0.0.40
codegen_flags: <defaults>
</compile_context>

<pallas_src>
import jax
import jax.numpy as jnp
from jax.experimental import pallas as pl
from jax.experimental.pallas import tpu as pltpu

LN_EPS = 1e-5  # PyTorch nn.LayerNorm default


def _pos_enc_ln_kernel(x_ref, pos_ref, gamma_ref, beta_ref, o_ref):
    # x_ref:     (B_TILE, L, D)  batch-tile of the input
    # pos_ref:   (L, D)          first L rows of the position-embedding table
    # gamma_ref: (1, D)          LayerNorm weight
    # beta_ref:  (1, D)          LayerNorm bias
    x = x_ref[...].astype(jnp.float32)            # (B_TILE, L, D)
    pos = pos_ref[...].astype(jnp.float32)        # (L, D)

    h = x + pos                                   # broadcast over leading tile dim

    # LayerNorm over the hidden dim, biased variance (PyTorch semantics).
    mean = jnp.mean(h, axis=-1, keepdims=True)
    centered = h - mean
    var = jnp.mean(centered * centered, axis=-1, keepdims=True)
    inv_std = jax.lax.rsqrt(var + LN_EPS)         # EUP

    gamma = gamma_ref[...].astype(jnp.float32)    # (1, D)
    beta = beta_ref[...].astype(jnp.float32)      # (1, D)

    # Fold gamma into the normalization scale before the elementwise apply.
    o_ref[...] = (centered * (inv_std * gamma) + beta).astype(o_ref.dtype)


def trainable_positional_encoding(input_feat, pos_table, ln_weight, ln_bias,
                                  *, target_tile_elems=512 * 1024):
    """Eval-mode forward.

    input_feat: (N, L, D); pos_table: (max_pos, D); ln_weight/ln_bias: (D,).
    """
    N, L, D = input_feat.shape
    max_pos = pos_table.shape[0]
    assert max_pos >= L, "sequence longer than max_position_embeddings"

    # Batch tile sized so one input block is ~2 MiB of f32-equivalent elements
    # (double-buffered in + out + f32 temps stay well under 32 MiB of VMEM).
    b_tile = max(1, min(N, target_tile_elems // max(1, L * D)))
    grid = (pl.cdiv(N, b_tile),)

    # Window the first L rows of the table straight from HBM via BlockSpec when
    # (L, D) is a legal block against (max_pos, D); otherwise pre-slice once.
    if L == max_pos or L % 8 == 0:
        pos_in = pos_table
    else:
        pos_in = pos_table[:L, :]

    gamma = ln_weight.reshape(1, D)
    beta = ln_bias.reshape(1, D)

    itemsize = jnp.dtype(input_feat.dtype).itemsize
    cost = pl.CostEstimate(
        flops=10 * N * L * D,
        transcendentals=N * L,                      # one rsqrt per row
        bytes_accessed=(2 * N * L * D * itemsize    # read x + write out
                        + L * D * jnp.dtype(pos_table.dtype).itemsize
                        + 2 * D * 4),               # gamma, beta
    )

    return pl.pallas_call(
        _pos_enc_ln_kernel,
        out_shape=jax.ShapeDtypeStruct((N, L, D), input_feat.dtype),
        grid_spec=pltpu.PrefetchScalarGridSpec(
            num_scalar_prefetch=0,
            grid=grid,
            in_specs=[
                pl.BlockSpec((b_tile, L, D), lambda i: (i, 0, 0)),
                pl.BlockSpec((L, D), lambda i: (0, 0)),
                pl.BlockSpec((1, D), lambda i: (0, 0)),
                pl.BlockSpec((1, D), lambda i: (0, 0)),
            ],
            out_specs=pl.BlockSpec((b_tile, L, D), lambda i: (i, 0, 0)),
        ),
        compiler_params=pltpu.CompilerParams(
            dimension_semantics=("parallel",),
            vmem_limit_bytes=32 * 1024 * 1024,
        ),
        cost_estimate=cost,
    )(input_feat, pos_in, gamma, beta)


def _reference(input_feat, pos_table, ln_weight, ln_bias):
    N, L, D = input_feat.shape
    h = input_feat.astype(jnp.float32) + pos_table[:L][None, :, :].astype(jnp.float32)
    mean = jnp.mean(h, axis=-1, keepdims=True)
    var = jnp.mean((h - mean) ** 2, axis=-1, keepdims=True)
    y = (h - mean) * jax.lax.rsqrt(var + LN_EPS)
    return (y * ln_weight + ln_bias).astype(input_feat.dtype)


if __name__ == "__main__":
    # Small shapes consistent with the module's forward: (N, L, D)
    N, L, D = 2, 8, 32
    MAX_POS = 16  # max_position_embeddings

    key = jax.random.PRNGKey(0)
    k_x, k_pos, k_g, k_b = jax.random.split(key, 4)

    input_feat = jax.random.normal(k_x, (N, L, D), dtype=jnp.float32)
    # nn.Embedding weight: (max_position_embeddings, hidden_size), ~N(0,1)
    pos_table = jax.random.normal(k_pos, (MAX_POS, D), dtype=jnp.float32)
    # Perturbed LayerNorm params so gamma/beta participate non-trivially.
    ln_weight = jnp.ones((D,), jnp.float32) + 0.1 * jax.random.normal(k_g, (D,), jnp.float32)
    ln_bias = 0.1 * jax.random.normal(k_b, (D,), jnp.float32)

    out = trainable_positional_encoding(input_feat, pos_table, ln_weight, ln_bias)
    out = jax.block_until_ready(out)

    ref = _reference(input_feat, pos_table, ln_weight, ln_bias)
    assert out.shape == (N, L, D)
    assert jnp.allclose(out, ref, atol=1e-5, rtol=1e-5), "mismatch vs reference"

    print("KERNEL_OK")
</pallas_src>

<mosaic_0001>
module attributes {stable_mosaic.version = 11 : i64} {
  func.func @_pos_enc_ln_kernel(%arg0: i32, %arg1: memref<2x8x32xf32, #tpu.memory_space<vmem>>, %arg2: memref<8x32xf32, #tpu.memory_space<vmem>>, %arg3: memref<1x32xf32, #tpu.memory_space<vmem>>, %arg4: memref<1x32xf32, #tpu.memory_space<vmem>>, %arg5: memref<2x8x32xf32, #tpu.memory_space<vmem>>) attributes {dimension_semantics = [#tpu.dimension_semantics<parallel>], iteration_bounds = array<i64: 1>, scalar_prefetch = 0 : i64, scratch_operands = 0 : i64, tpu.core_type = #tpu.core_type<tc>, window_params = [{transform_indices = @transform_0, window_bounds = array<i64: 2, 8, 32>}, {transform_indices = @transform_1, window_bounds = array<i64: 8, 32>}, {pipeline_mode = #tpu.pipeline_mode<synchronous>, transform_indices = @transform_2, window_bounds = array<i64: 1, 32>}, {pipeline_mode = #tpu.pipeline_mode<synchronous>, transform_indices = @transform_3, window_bounds = array<i64: 1, 32>}, {transform_indices = @transform_4, window_bounds = array<i64: 2, 8, 32>}]} {
    %c0 = arith.constant 0 : index
    %c0_0 = arith.constant 0 : index
    %c0_1 = arith.constant 0 : index
    %0 = vector.load %arg1[%c0, %c0_0, %c0_1] : memref<2x8x32xf32, #tpu.memory_space<vmem>>, vector<2x8x32xf32>
    %c0_2 = arith.constant 0 : index
    %c0_3 = arith.constant 0 : index
    %1 = vector.load %arg2[%c0_2, %c0_3] : memref<8x32xf32, #tpu.memory_space<vmem>>, vector<8x32xf32>
    %2 = vector.shape_cast %1 : vector<8x32xf32> to vector<1x8x32xf32>
    %3 = vector.broadcast %2 : vector<1x8x32xf32> to vector<2x8x32xf32>
    %4 = arith.addf %0, %3 : vector<2x8x32xf32>
    %cst = arith.constant dense<0.000000e+00> : vector<2x8xf32>
    %5 = vector.multi_reduction <add>, %4, %cst [2] : vector<2x8x32xf32> to vector<2x8xf32>
    %6 = vector.shape_cast %5 : vector<2x8xf32> to vector<2x8x1xf32>
    %cst_4 = arith.constant 3.200000e+01 : f32
    %7 = vector.broadcast %cst_4 : f32 to vector<2x8x1xf32>
    %8 = arith.divf %6, %7 : vector<2x8x1xf32>
    %9 = vector.broadcast %8 : vector<2x8x1xf32> to vector<2x8x32xf32>
    %10 = arith.subf %4, %9 : vector<2x8x32xf32>
    %11 = arith.mulf %10, %10 : vector<2x8x32xf32>
    %cst_5 = arith.constant dense<0.000000e+00> : vector<2x8xf32>
    %12 = vector.multi_reduction <add>, %11, %cst_5 [2] : vector<2x8x32xf32> to vector<2x8xf32>
    %13 = vector.shape_cast %12 : vector<2x8xf32> to vector<2x8x1xf32>
    %cst_6 = arith.constant 3.200000e+01 : f32
    %14 = vector.broadcast %cst_6 : f32 to vector<2x8x1xf32>
    %15 = arith.divf %13, %14 : vector<2x8x1xf32>
    %cst_7 = arith.constant 9.99999974E-6 : f32
    %16 = vector.broadcast %cst_7 : f32 to vector<2x8x1xf32>
    %17 = arith.addf %15, %16 : vector<2x8x1xf32>
    %18 = math.rsqrt %17 : vector<2x8x1xf32>
    %c0_8 = arith.constant 0 : index
    %c0_9 = arith.constant 0 : index
    %19 = vector.load %arg3[%c0_8, %c0_9] : memref<1x32xf32, #tpu.memory_space<vmem>>, vector<1x32xf32>
    %c0_10 = arith.constant 0 : index
    %c0_11 = arith.constant 0 : index
    %20 = vector.load %arg4[%c0_10, %c0_11] : memref<1x32xf32, #tpu.memory_space<vmem>>, vector<1x32xf32>
    %21 = vector.shape_cast %19 : vector<1x32xf32> to vector<1x1x32xf32>
    %22 = vector.broadcast %18 : vector<2x8x1xf32> to vector<2x8x32xf32>
    %23 = vector.broadcast %21 : vector<1x1x32xf32> to vector<2x8x32xf32>
    %24 = arith.mulf %22, %23 : vector<2x8x32xf32>
    %25 = arith.mulf %10, %24 : vector<2x8x32xf32>
    %26 = vector.shape_cast %20 : vector<1x32xf32> to vector<1x1x32xf32>
    %27 = vector.broadcast %26 : vector<1x1x32xf32> to vector<2x8x32xf32>
    %28 = arith.addf %25, %27 : vector<2x8x32xf32>
    %c0_12 = arith.constant 0 : index
    %c0_13 = arith.constant 0 : index
    %c0_14 = arith.constant 0 : index
    %29 = vector.load %arg5[%c0_12, %c0_13, %c0_14] : memref<2x8x32xf32, #tpu.memory_space<vmem>>, vector<2x8x32xf32>
    tpu.vector_store %arg5[%c0_12, %c0_13, %c0_14], %28 {strides = array<i32>} : memref<2x8x32xf32, #tpu.memory_space<vmem>>, vector<2x8x32xf32>,
    return
  }
  func.func @transform_0(%arg0: i32) -> (i32, i32, i32) {
    %c0_i32 = arith.constant 0 : i32
    %c0_i32_0 = arith.constant 0 : i32
    %c0_i32_1 = arith.constant 0 : i32
    return %arg0, %c0_i32, %c0_i32_0 : i32, i32, i32
  }
  func.func @transform_1(%arg0: i32) -> (i32, i32) {
    %c0_i32 = arith.constant 0 : i32
    %c0_i32_0 = arith.constant 0 : i32
    %c0_i32_1 = arith.constant 0 : i32
    return %c0_i32, %c0_i32_0 : i32, i32
  }
  func.func @transform_2(%arg0: i32) -> (i32, i32) {
    %c0_i32 = arith.constant 0 : i32
    %c0_i32_0 = arith.constant 0 : i32
    %c0_i32_1 = arith.constant 0 : i32
    return %c0_i32, %c0_i32_0 : i32, i32
  }
  func.func @transform_3(%arg0: i32) -> (i32, i32) {
    %c0_i32 = arith.constant 0 : i32
    %c0_i32_0 = arith.constant 0 : i32
    %c0_i32_1 = arith.constant 0 : i32
    return %c0_i32, %c0_i32_0 : i32, i32
  }
  func.func @transform_4(%arg0: i32) -> (i32, i32, i32) {
    %c0_i32 = arith.constant 0 : i32
    %c0_i32_0 = arith.constant 0 : i32
    %c0_i32_1 = arith.constant 0 : i32
    return %arg0, %c0_i32, %c0_i32_0 : i32, i32, i32
  }
}

</mosaic_0001>

<bundles_post_ra>
// kernel: tpu_custom_call.1
= control target key start
LH: loop header
LB: loop body
LE: loop exit
PB: predicated region body
PF: predicated region fallthrough
CT: control target
= control target key end

     0   :  { %9 = vsyncpa [#allocation3], 0  ;;  %s285_s0 = inlined_call_operand.hbm [shape: f32[2,8,32], index: 0, kind: input, shape index: {}]   ;;  %s286_s1 = inlined_call_operand.hbm [shape: f32[16,32], index: 1, kind: input, shape index: {}]   ;;  %s287_s2 = inlined_call_operand.vmem [shape: f32[1,32], index: 2, kind: input, shape index: {}]   ;;  %s288_s3 = inlined_call_operand.vmem [shape: f32[1,32], index: 3, kind: input, shape index: {}]   ;;  %s289_s4 = inlined_call_operand.hbm [shape: f32[2,8,32], index: 4, kind: output, shape index: {}]  }
   0x1   :  { %10 = vsyncpa [#allocation6], 0 }
   0x2   :  { %11 = vsyncpa [#allocation4], 0  ;;  %s198_s15 = smov [#allocation2]   ;;  %s126_s19 = scalar_lea.hbm %s285_s0, 256 }
   0x3   :  { %s17_s16 = sshll.u32 %s198_s15, 4  ;;  %p127_p0 = scmp.ne.s32.totalorder %s285_s0, %s126_s19  ;;  %s18_s16 = int_to_ptr.vmem [resolvable:$true] %s17_s16 }
   0x4   :  { %p130_p1 = scmp.lt.u32.totalorder %s126_s19, %s285_s0 }
   0x6   :  { %p132_p2 = pnand %p130_p1, %p127_p0 }
   0x8   :  { %135 = shalt.err (!%p132_p2)
}
   0x9   :  { %s136_s24 = scalar_lea.vmem %s18_s16, 256  ;;  %p141_p4 = scmp.lt.s32.totalorder %s18_s16, %s18_s16 }
   0xa   :  { %p137_p3 = scmp.ne.s32.totalorder %s18_s16, %s136_s24  ;;  %p142_p5 = scmp.lt.s32.totalorder %s136_s24, %s136_s24 }
   0xc   :  { %p143_p6 = por %p142_p5, %p141_p4 }
   0xe   :  { %p144_p7 = pnand %p143_p6, %p137_p3 }
  0x10   :  { %147 = shalt.err (!%p144_p7)
}
  0x11   :  { %s199_s25 = smov 128   ;;  %s200_s26 = smov 8  }
  0x12   :  { %23 = dma.hbm_to_vmem [thread:$0]  %s285_s0, 256, %s18_s16, [#allocation3], %s199_s25, %s199_s25, %s200_s26  }
  0x13   :  { %s201_s29 = smov [#allocation5]   ;;  %s148_s7 = scalar_lea.hbm %s286_s1, 128 }
  0x14   :  { %s30_s30 = sshll.u32 %s201_s29, 4  ;;  %p149_p8 = scmp.ne.s32.totalorder %s286_s1, %s148_s7  ;;  %s31_s30 = int_to_ptr.vmem [resolvable:$true] %s30_s30 }
  0x15   :  { %s150_s12 = scalar_lea.hbm %s286_s1, 256  ;;  %p152_p10 = scmp.lt.u32.totalorder %s148_s7, %s286_s1 }
  0x16   :  { %p151_p9 = scmp.lt.u32.totalorder %s150_s12, %s148_s7 }
  0x18   :  { %p153_p11 = por %p152_p10, %p151_p9 }
  0x1a   :  { %p154_p12 = pnand %p153_p11, %p149_p8 }
  0x1c   :  { %157 = shalt.err (!%p154_p12)
}
  0x1d   :  { %s158_s0 = scalar_lea.vmem %s31_s30, 128  ;;  %p163_p0 = scmp.lt.s32.totalorder %s31_s30, %s31_s30 }
  0x1e   :  { %p159_p13 = scmp.ne.s32.totalorder %s31_s30, %s158_s0  ;;  %p164_p1 = scmp.lt.s32.totalorder %s158_s0, %s158_s0 }
  0x20   :  { %p165_p2 = por %p164_p1, %p163_p0 }
  0x22   :  { %p166_p3 = pnand %p165_p2, %p159_p13 }
  0x24   :  { %169 = shalt.err (!%p166_p3)
}
  0x25   :  { %33 = dma.hbm_to_vmem [thread:$0]  %s286_s1, 128, %s31_s30, [#allocation6]  }
  0x26   :  { %192 = dma.done.wait [#allocation3], 256  }
  0x27   :  { %193 = vsyncadd [#allocation3], 4294967040 }
  0x28   :  { %194 = dma.done.wait [#allocation6], 128  }
  0x29   :  { %195 = vsyncadd [#allocation6], 4294967168  ;;  %v44_v0 = vld [vmem:[#allocation2] sm:$0xff]  ;;  %v46_v1 = vld [vmem:[#allocation5] sm:$0xff]  ;;  %vm49_vm0 = vcmask 261120   ;;  %s202_s20 = smov [#allocation7]  }
  0x2a   :  { %v45_v2 = vld [vmem:[#allocation2 + $0x8] sm:$0xff]  ;;  %v47_v3 = vadd.f32 %v46_v1, %v44_v0  ;;  %v115_v23 = vld [vmem:[%s287_s2] ss:$0 sm:$0xff]  ;;  %s102_s21 = sshll.u32 %s202_s20, 4  ;;  %s103_s21 = int_to_ptr.vmem [resolvable:$true] %s102_s21 }
  0x2b   :  { %v48_v4 = vadd.f32 %v46_v1, %v45_v2  ;;  %v116_v26 = vld [vmem:[%s288_s3] ss:$0 sm:$0xff]  ;;  %s170_s2 = scalar_lea.vmem %s103_s21, 256  ;;  %p175_p5 = scmp.lt.s32.totalorder %s103_s21, %s103_s21 }
  0x2c   :  { %v50_v5 = vsel %vm49_vm0, %v47_v3, 0.0  ;;  %p171_p4 = scmp.ne.s32.totalorder %s103_s21, %s170_s2  ;;  %p176_p6 = scmp.lt.s32.totalorder %s170_s2, %s170_s2 }
  0x2d   :  { %51 = vadd.xlane.f32.xlu0 %v50_v5  ;;  %v53_v6 = vsel %vm49_vm0, %v48_v4, 0.0 }
  0x2e   :  { %p177_p7 = por %p176_p6, %p175_p5 }
  0x30   :  { %p178_p8 = pnand %p177_p7, %p171_p4 }
  0x31   :  { %54 = vadd.xlane.f32.xlu0 %v53_v6 }
  0xba   :  { %v52_v7 = vpop.xlane.xlu0 %51 }
  0xbb   :  { %v57_v8 = vmul.f32 0.03125, %v52_v7 }
  0xbd   :  { %v59_v9 = vsub.f32 %v47_v3, %v57_v8 }
  0xbe   :  { %v55_v10 = vpop.xlane.xlu0 %54 }
  0xbf   :  { %v58_v11 = vmul.f32 0.03125, %v55_v10  ;;  %v61_v12 = vmul.f32 %v59_v9, %v59_v9 }
  0xc1   :  { %v60_v13 = vsub.f32 %v48_v4, %v58_v11  ;;  %v63_v14 = vsel %vm49_vm0, %v61_v12, 0.0 }
  0xc2   :  { %64 = vadd.xlane.f32.xlu1 %v63_v14 }
  0xc3   :  { %v62_v15 = vmul.f32 %v60_v13, %v60_v13 }
  0xc5   :  { %v66_v16 = vsel %vm49_vm0, %v62_v15, 0.0 }
  0xc6   :  { %67 = vadd.xlane.f32.xlu1 %v66_v16 }
 0x14f   :  { %v65_v17 = vpop.xlane.xlu1 %64 }
 0x150   :  { %v69_v18 = vmul.f32 0.03125, %v65_v17 }
 0x152   :  { %v71_v19 = vadd.f32 1e-05, %v69_v18 }
 0x153   :  { %v68_v20 = vpop.xlane.xlu1 %67 }
 0x154   :  { %122 = vrsqrt.f32 %v71_v19  ;;  %v70_v21 = vmul.f32 0.03125, %v68_v20 }
 0x156   :  { %v72_v22 = vadd.f32 1e-05, %v70_v21 }
 0x158   :  { %124 = vrsqrt.f32 %v72_v22 }
 0x15e   :  { %v123_v24 = vpop.eup %122 }
 0x15f   :  { %v83_v25 = vmul.f32 %v123_v24, %v115_v23 }
 0x161   :  { %v85_v27 = vmul.f32 %v83_v25, %v59_v9 }
 0x162   :  { %v125_v28 = vpop.eup %124 }
 0x163   :  { %v84_v29 = vmul.f32 %v125_v28, %v115_v23  ;;  %v93_v30 = vadd.f32 %v116_v26, %v85_v27 }
 0x165   :  { %v86_v31 = vmul.f32 %v84_v29, %v60_v13  ;;  %95 = vst.msk [vmem:[#allocation7] sm:$0xff] %vm49_vm0, %v93_v30 }
 0x167   :  { %v94_v32 = vadd.f32 %v116_v26, %v86_v31 }
 0x169   :  { %96 = vst.msk [vmem:[#allocation7 + $0x8] sm:$0xff] %vm49_vm0, %v94_v32 }
 0x16a   :  { %181 = shalt.err (!%p178_p8)
}
 0x16b   :  { %s182_s23 = scalar_lea.hbm %s289_s4, 256 }
 0x16c   :  { %p183_p9 = scmp.ne.s32.totalorder %s289_s4, %s182_s23  ;;  %p186_p10 = scmp.lt.u32.totalorder %s182_s23, %s289_s4 }
 0x16e   :  { %p188_p11 = pnand %p186_p10, %p183_p9 }
 0x170   :  { %191 = shalt.err (!%p188_p11)
}
 0x171   :  { %108 = dma.vmem_to_hbm [thread:$0]  %s103_s21, 256, %s289_s4, [#allocation4], %s199_s25, %s199_s25, %s200_s26  }
 0x172   :  { %196 = dma.done.wait [#allocation4], 256  }
 0x173   :  { %197 = vsyncadd [#allocation4], 4294967040 }
 0x174   :  { %112 = vsyncpa [#allocation3], 1 }
 0x175   :  { %113 = vsyncpa [#allocation6], 1 }
 0x176   :  { %114 = vsyncpa [#allocation4], 1 }

</bundles_post_ra>
